<compile_context>
chip_gen: v5e
topology: v5e:2x2
jax: 0.10.0
libtpu: 0.0.40
codegen_flags: <defaults>
</compile_context>

<pallas_src>
import functools

import numpy as np
import jax
import jax.numpy as jnp
from jax.experimental import pallas as pl
from jax.experimental.pallas import tpu as pltpu


# ---------------------------------------------------------------------------
# Pallas kernel: single fused matmul  out = x @ W_comb + b_comb
# ---------------------------------------------------------------------------
def dlinear_kernel(x_ref, w_ref, b_ref, o_ref):
    o_ref[...] = (
        jnp.dot(x_ref[...], w_ref[...], preferred_element_type=jnp.float32)
        + b_ref[...]
    ).astype(o_ref.dtype)


def _round_up(x, m):
    return ((x + m - 1) // m) * m


def _pick_batch_tile(B, block_b, min_tile=256):
    """Batch tile: >= 2 grid steps once B is large (v7x megacore), >= 8 sublanes,
    never larger than block_b (keeps double-buffered footprint VMEM-safe)."""
    tb = _round_up(pl.cdiv(B, 2), 8)                  # ~half the batch
    tb = max(tb, min(min_tile, _round_up(B, 8)))      # sensible floor
    return min(tb, block_b)


def dlinear_matmul_pallas(x_ot, w_comb, b_comb, *, block_b=2048,
                          out_dtype=jnp.float32):
    """x_ot: [B, L], w_comb: [L, P], b_comb: [1, P]  ->  [B, P] (out_dtype)."""
    B, L = x_ot.shape
    P = w_comb.shape[1]

    TB = _pick_batch_tile(B, block_b)
    grid = (pl.cdiv(B, TB),)                          # ragged last block is fine

    # Lane-pad the output only when pred_len is large enough that the <35%
    # padding overhead buys unmasked lane-dense stores; for tiny P the HBM
    # write amplification would dominate (kernel is memory-bound).
    pad_lanes = (P >= 64) and (P % 128 != 0)
    P_out = _round_up(P, 128) if pad_lanes else P
    if pad_lanes:
        # Tiny [L, P] params; negligible even when traced per call.
        w_comb = jnp.zeros((L, P_out), w_comb.dtype).at[:, :P].set(w_comb)
        b_comb = jnp.zeros((1, P_out), b_comb.dtype).at[:, :P].set(b_comb)

    cost = pl.CostEstimate(
        flops=2 * B * L * P_out,
        transcendentals=0,
        bytes_accessed=(B * L * np.dtype(x_ot.dtype).itemsize
                        + L * P_out * np.dtype(w_comb.dtype).itemsize
                        + P_out * np.dtype(b_comb.dtype).itemsize
                        + B * P_out * np.dtype(out_dtype).itemsize),
    )

    out = pl.pallas_call(
        dlinear_kernel,
        out_shape=jax.ShapeDtypeStruct((B, P_out), out_dtype),
        grid=grid,
        in_specs=[
            pl.BlockSpec((TB, L), lambda i: (i, 0)),        # batch-tiled x_ot
            pl.BlockSpec((L, P_out), lambda i: (0, 0)),     # fused weight (grid-invariant)
            pl.BlockSpec((1, P_out), lambda i: (0, 0)),     # fused bias   (grid-invariant)
        ],
        out_specs=pl.BlockSpec((TB, P_out), lambda i: (i, 0)),
        compiler_params=pltpu.CompilerParams(
            dimension_semantics=("parallel",)),
        cost_estimate=cost,
    )(x_ot, w_comb, b_comb)

    if pad_lanes:
        out = out[:, :P]
    return out


# ---------------------------------------------------------------------------
# Jitted forward: OT-channel extraction + cast fuse with the pallas_call.
# ---------------------------------------------------------------------------
@functools.partial(jax.jit,
                   static_argnames=("ot_index", "compute_dtype", "block_b"))
def dlinear_leakproof_forward(x, w_comb, b_comb, *, ot_index,
                              compute_dtype=jnp.bfloat16, block_b=2048):
    """x: [B, L, F] f32 -> [B, P] f32.  Dropout = identity (eval mode)."""
    # Under jit the gather + cast fuse into a single pass over x.
    # For production, keep the OT channel contiguous upstream instead.
    x_ot = x[:, :, ot_index].astype(compute_dtype)
    return dlinear_matmul_pallas(
        x_ot,
        w_comb.astype(compute_dtype),
        b_comb.astype(jnp.float32),
        block_b=block_b,
        out_dtype=jnp.float32,
    )


# ---------------------------------------------------------------------------
# Host-side parameter fusion and helpers (computed once per set of params)
# ---------------------------------------------------------------------------
def build_moving_avg_matrix(L, kernel_size):
    """A[j, t] such that (x @ A)[b, t] == MovingAvg(kernel_size, stride=1)(x)[b, t]."""
    half = (kernel_size - 1) // 2
    A = np.zeros((L, L), dtype=np.float32)
    for t in range(L):
        for d in range(kernel_size):
            j = min(max(t + d - half, 0), L - 1)          # replicate padding
            A[j, t] += 1.0 / kernel_size
    return jnp.asarray(A)


def fuse_dlinear_params(avg_mat, w_s, b_s, w_t, b_t):
    """Exact algebraic fusion:  out = x @ (Ws + A @ (Wt - Ws)) + (bs + bt)."""
    w_comb = w_s + avg_mat @ (w_t - w_s)                   # [L, P]
    b_comb = b_s + b_t                                     # [1, P]
    return w_comb, b_comb


def init_linear(key, in_features, out_features):
    """Deterministic nn.Linear-style init. Returns (W^T [in,out], b [1,out])."""
    k1, k2 = jax.random.split(key)
    bound = 1.0 / np.sqrt(in_features)
    w = jax.random.uniform(k1, (out_features, in_features), jnp.float32, -bound, bound)
    b = jax.random.uniform(k2, (out_features,), jnp.float32, -bound, bound)
    return w.T, b[None, :]


def reference_forward(x, ot_index, kernel_size, w_s, b_s, w_t, b_t):
    """Pure-JAX reference matching the PyTorch forward (eval mode), unfused."""
    x_ot = x[:, :, ot_index]                                # [B, L]
    half = (kernel_size - 1) // 2
    front = jnp.repeat(x_ot[:, :1], half, axis=1)
    end = jnp.repeat(x_ot[:, -1:], half, axis=1)
    pad = jnp.concatenate([front, x_ot, end], axis=1)       # [B, L + 2*half]
    L = x_ot.shape[1]
    trend = jnp.stack(
        [pad[:, t:t + kernel_size].mean(axis=1) for t in range(L)], axis=1)
    seasonal = x_ot - trend
    return seasonal @ w_s + b_s + trend @ w_t + b_t


if __name__ == "__main__":
    B = 2              # batch
    input_len = 16     # sequence length
    feature_dim = 13   # >= 7 so OT (index 6) exists
    kernel_size = 5    # odd, as in DLinear
    ot_index = 6       # feature_cols.index('OT')

    key = jax.random.PRNGKey(0)
    kx, ks, kt, ks2, kt2 = jax.random.split(key, 5)

    x = jax.random.normal(kx, (B, input_len, feature_dim), jnp.float32)
    avg_mat = build_moving_avg_matrix(input_len, kernel_size)

    # ---- config 1: tiny pred_len (unpadded output path) ----
    pred_len = 8
    w_s, b_s = init_linear(ks, input_len, pred_len)
    w_t, b_t = init_linear(kt, input_len, pred_len)
    w_comb, b_comb = fuse_dlinear_params(avg_mat, w_s, b_s, w_t, b_t)
    ref = reference_forward(x, ot_index, kernel_size, w_s, b_s, w_t, b_t)

    # f32 compute path: tight numerical check against the unfused reference.
    out_f32 = jax.block_until_ready(dlinear_leakproof_forward(
        x, w_comb, b_comb, ot_index=ot_index, compute_dtype=jnp.float32))
    np.testing.assert_allclose(np.asarray(out_f32), np.asarray(ref),
                               rtol=1e-5, atol=1e-5)

    # bf16 compute path (production / bandwidth-optimized): loose tolerance.
    out_bf16 = jax.block_until_ready(dlinear_leakproof_forward(
        x, w_comb, b_comb, ot_index=ot_index, compute_dtype=jnp.bfloat16))
    np.testing.assert_allclose(np.asarray(out_bf16), np.asarray(ref),
                               rtol=5e-2, atol=5e-2)

    # ---- config 2: realistic pred_len=96 (lane-padded output path) ----
    pred_len2 = 96
    w_s2, b_s2 = init_linear(ks2, input_len, pred_len2)
    w_t2, b_t2 = init_linear(kt2, input_len, pred_len2)
    w_comb2, b_comb2 = fuse_dlinear_params(avg_mat, w_s2, b_s2, w_t2, b_t2)
    ref2 = reference_forward(x, ot_index, kernel_size, w_s2, b_s2, w_t2, b_t2)

    out2 = jax.block_until_ready(dlinear_leakproof_forward(
        x, w_comb2, b_comb2, ot_index=ot_index, compute_dtype=jnp.float32))
    np.testing.assert_allclose(np.asarray(out2), np.asarray(ref2),
                               rtol=1e-5, atol=1e-5)

    print("KERNEL_OK")
</pallas_src>

<mosaic_0001>
module attributes {stable_mosaic.version = 11 : i64} {
  func.func @dlinear_kernel(%arg0: i32, %arg1: memref<8x16xf32, #tpu.memory_space<vmem>>, %arg2: memref<16x8xf32, #tpu.memory_space<vmem>>, %arg3: memref<1x8xf32, #tpu.memory_space<vmem>>, %arg4: memref<8x8xf32, #tpu.memory_space<vmem>>) attributes {dimension_semantics = [#tpu.dimension_semantics<parallel>], iteration_bounds = array<i64: 1>, scalar_prefetch = 0 : i64, scratch_operands = 0 : i64, tpu.core_type = #tpu.core_type<tc>, window_params = [{transform_indices = @transform_0, window_bounds = array<i64: 8, 16>}, {pipeline_mode = #tpu.pipeline_mode<synchronous>, transform_indices = @transform_1, window_bounds = array<i64: 16, 8>}, {pipeline_mode = #tpu.pipeline_mode<synchronous>, transform_indices = @transform_2, window_bounds = array<i64: 1, 8>}, {transform_indices = @transform_3, window_bounds = array<i64: 8, 8>}]} {
    %c0 = arith.constant 0 : index
    %c0_0 = arith.constant 0 : index
    %0 = vector.load %arg1[%c0, %c0_0] : memref<8x16xf32, #tpu.memory_space<vmem>>, vector<8x16xf32>
    %c0_1 = arith.constant 0 : index
    %c0_2 = arith.constant 0 : index
    %1 = vector.load %arg2[%c0_1, %c0_2] : memref<16x8xf32, #tpu.memory_space<vmem>>, vector<16x8xf32>
    %cst = arith.constant dense<0.000000e+00> : vector<8x8xf32>
    %2 = tpu.matmul %0, %1, %cst {dimension_numbers = #tpu.dot_dimension_numbers<[1], [0], [0], [1], [0, 0, 1, 1], [], []>} : vector<8x16xf32>, vector<16x8xf32>, vector<8x8xf32> -> vector<8x8xf32>
    %c0_3 = arith.constant 0 : index
    %c0_4 = arith.constant 0 : index
    %3 = vector.load %arg3[%c0_3, %c0_4] : memref<1x8xf32, #tpu.memory_space<vmem>>, vector<1x8xf32>
    %4 = vector.broadcast %3 : vector<1x8xf32> to vector<8x8xf32>
    %5 = arith.addf %2, %4 : vector<8x8xf32>
    %c0_5 = arith.constant 0 : index
    %c0_6 = arith.constant 0 : index
    %6 = vector.load %arg4[%c0_5, %c0_6] : memref<8x8xf32, #tpu.memory_space<vmem>>, vector<8x8xf32>
    tpu.vector_store %arg4[%c0_5, %c0_6], %5 {strides = array<i32>} : memref<8x8xf32, #tpu.memory_space<vmem>>, vector<8x8xf32>,
    return
  }
  func.func @transform_0(%arg0: i32) -> (i32, i32) {
    %c0_i32 = arith.constant 0 : i32
    %c0_i32_0 = arith.constant 0 : i32
    return %arg0, %c0_i32 : i32, i32
  }
  func.func @transform_1(%arg0: i32) -> (i32, i32) {
    %c0_i32 = arith.constant 0 : i32
    %c0_i32_0 = arith.constant 0 : i32
    %c0_i32_1 = arith.constant 0 : i32
    return %c0_i32, %c0_i32_0 : i32, i32
  }
  func.func @transform_2(%arg0: i32) -> (i32, i32) {
    %c0_i32 = arith.constant 0 : i32
    %c0_i32_0 = arith.constant 0 : i32
    %c0_i32_1 = arith.constant 0 : i32
    return %c0_i32, %c0_i32_0 : i32, i32
  }
  func.func @transform_3(%arg0: i32) -> (i32, i32) {
    %c0_i32 = arith.constant 0 : i32
    %c0_i32_0 = arith.constant 0 : i32
    return %arg0, %c0_i32 : i32, i32
  }
}

</mosaic_0001>

<bundles_post_ra>
// kernel: dlinear_leakproof_forward.1
= control target key start
LH: loop header
LB: loop body
LE: loop exit
PB: predicated region body
PF: predicated region fallthrough
CT: control target
= control target key end

     0   :  { %8 = vsyncpa [#allocation3], 0  ;;  %vm22_vm0 = vcmask 130048   ;;  %vm46_vm1 = vcmask 64512   ;;  %s135_s0 = inlined_call_operand.vmem [shape: f32[2,16], index: 0, kind: input, shape index: {}]   ;;  %s136_s1 = inlined_call_operand.vmem [shape: f32[16,8], index: 1, kind: input, shape index: {}]   ;;  %s137_s2 = inlined_call_operand.vmem [shape: f32[1,8], index: 2, kind: input, shape index: {}]   ;;  %s138_s3 = inlined_call_operand.hbm [shape: f32[2,8], index: 3, kind: output, shape index: {}]  }
   0x1   :  { %v17_v0 = vld [vmem:[%s136_s1 + $0x8] sm:$0xff]  ;;  %v16_v1 = vld [vmem:[%s136_s1] sm:$0xff] }
   0x2   :  { %40 = vmatpush.msra.mxu0 %v17_v0  ;;  %v15_v2 = vld [vmem:[%s135_s0] sm:$0xff] }
   0x3   :  { %v70_v3 = vld [vmem:[%s137_s2] ss:$0 sm:$0xff] }
   0x4   :  { %41 = vmatpush.msra.mxu0 %v16_v1 }
   0x5   :  { %66 = vmatmul.msk.f32.vlgmr.msra.gmra.mxu0 %vm22_vm0, %v15_v2 }
  0x82   :  { %v43_v4 = vpop.f32.mrf.mxu0 }
  0x83   :  { %v44_v5 = vadd.f32 %v70_v3, %v43_v4 }
  0x85   :  { %47 = vst.msk [vmem:[#allocation2] sm:$0xff] %vm46_vm1, %v44_v5 }
  0x86   :  { %51 = vsyncadd [#allocation3], 96  ;;  %s54_s1 = sshll.u32 %s138_s3, 4  ;;  %s97_s22 = smov [#allocation2]   ;;  %s55_s1 = int_to_ptr.hbm [resolvable:$true] %s54_s1 }
  0x87   :  { %s52_s23 = sshll.u32 %s97_s22, 4  ;;  %s98_s0 = smov 32   ;;  %s53_s23 = int_to_ptr.vmem [resolvable:$true] %s52_s23 }
  0x88   :  { %s99_s24 = smov 2  }
  0x89   :  { %60 = dma.vmem_to_hbm [thread:$0]  %s53_s23, 32, %s55_s1, [#allocation3], %s98_s0, %s98_s0, %s99_s24  }
  0x8a   :  { %95 = dma.done.wait [#allocation3], 128  }
  0x8b   :  { %96 = vsyncadd [#allocation3], 4294967168 }
  0x8c   :  { %65 = vsyncpa [#allocation3], 1 }

</bundles_post_ra>
